<compile_context>
chip_gen: v5e
topology: v5e:2x2
jax: 0.10.0
libtpu: 0.0.40
codegen_flags: <defaults>
</compile_context>

<pallas_src>
import functools
import math

import jax
import jax.numpy as jnp
from jax.experimental import pallas as pl
from jax.experimental.pallas import tpu as pltpu


def _round_up(n, m):
    return ((n + m - 1) // m) * m


def _policy_kernel(x_ref, w1_ref, b1_ref, w2_ref, b2_ref, wh_ref, bh_ref,
                   out_ref, *, epsilon, output_size, compute_dtype):
    # f32 -> bf16 cast on the VPU (free slot) instead of a wrapper-side XLA pass.
    x = x_ref[...].astype(compute_dtype)

    # fc1 + relu  (MXU matmul with f32 accumulation; bias/relu in f32 on VPU)
    h1 = jnp.dot(x, w1_ref[...], preferred_element_type=jnp.float32) + b1_ref[...]
    h1 = jnp.maximum(h1, 0.0).astype(compute_dtype)

    # fc2 + relu
    h2 = jnp.dot(h1, w2_ref[...], preferred_element_type=jnp.float32) + b2_ref[...]
    h2 = jnp.maximum(h2, 0.0).astype(compute_dtype)

    # fused heads: [fc3_mean | fc3_std] in a single matmul
    heads = jnp.dot(h2, wh_ref[...], preferred_element_type=jnp.float32) + bh_ref[...]

    # overflow-safe softplus applied to the std half; mean half passes through
    # unchanged via a lane-column select.
    softplus = (jnp.maximum(heads, 0.0)
                + jnp.log1p(jnp.exp(-jnp.abs(heads)))
                + epsilon)
    col = jax.lax.broadcasted_iota(jnp.int32, heads.shape, dimension=1)
    out_ref[...] = jnp.where(col >= output_size, softplus, heads).astype(out_ref.dtype)


def prepare_policy_params(params, compute_dtype=jnp.bfloat16):
    """Fuse the two head layers and cast matmul weights to the compute dtype.

    Call once outside the rollout loop.  Biases stay f32 (bias add / epilogue
    run in f32 inside the kernel).
    """
    wh = jnp.concatenate([params["wm"], params["ws"]], axis=1)
    bh = jnp.concatenate([params["bm"], params["bs"]], axis=1)
    return dict(
        w1=params["w1"].astype(compute_dtype),
        b1=params["b1"].astype(jnp.float32),
        w2=params["w2"].astype(compute_dtype),
        b2=params["b2"].astype(jnp.float32),
        wh=wh.astype(compute_dtype),
        bh=bh.astype(jnp.float32),
    )


def _choose_batch_tile(batch, tile_batch):
    """Batch tile: large (few grid steps), multiple of 8, VMEM-safe on v5e,
    and small enough that the grid has >= 2 steps when the batch allows
    (so v7x's two TensorCores both get work)."""
    if batch <= 8:
        # Single block equal to the full (tiny) batch: block dim == array dim
        # satisfies the (8, 128) rule without padding.
        return batch
    tb = max(8, (min(tile_batch, 4096) // 8) * 8)            # v5e scoped-VMEM cap
    tb = min(tb, max(8, _round_up(pl.cdiv(batch, 2), 8)))     # >= 2 grid steps
    tb = min(tb, _round_up(batch, 8))
    return tb


def policy_forward(x, prepared, epsilon=0.0001, tile_batch=2048):
    """Policy forward pass via a batch-tiled Pallas TPU kernel.

    x: [batch, input_size] float32
    prepared: output of prepare_policy_params
    returns: (mean [batch, output_size], std [batch, output_size]) in float32
    """
    batch, input_size = x.shape
    two_out = prepared["wh"].shape[1]
    output_size = two_out // 2
    compute_dtype = prepared["w1"].dtype

    tb = _choose_batch_tile(batch, tile_batch)
    num_steps = pl.cdiv(batch, tb)

    # CORE_PARALLEL shards grid steps across v7x's two TensorCores; plain
    # "parallel" is the safe fallback (single-step grids / older JAX).
    if num_steps >= 2 and hasattr(pltpu, "CORE_PARALLEL"):
        dim_sem = (pltpu.CORE_PARALLEL,)
    else:
        dim_sem = ("parallel",)

    kernel = functools.partial(
        _policy_kernel,
        epsilon=epsilon,
        output_size=output_size,
        compute_dtype=compute_dtype,
    )

    # Advisory cost so XLA overlaps this cheap call with surrounding rollout ops.
    flops = 2 * batch * (input_size * 128 + 128 * 64 + 64 * two_out)
    weight_bytes = sum(int(v.size) * v.dtype.itemsize for v in prepared.values())
    bytes_accessed = batch * input_size * 4 + batch * two_out * 4 + weight_bytes
    cost = pl.CostEstimate(flops=flops,
                           transcendentals=2 * batch * two_out,
                           bytes_accessed=bytes_accessed)

    const = lambda i: (0, 0)  # weights/biases: same block every step (VMEM-resident)
    fused = pl.pallas_call(
        kernel,
        out_shape=jax.ShapeDtypeStruct((batch, two_out), jnp.float32),
        grid=(num_steps,),
        in_specs=[
            pl.BlockSpec((tb, input_size), lambda i: (i, 0)),   # x (streamed, f32)
            pl.BlockSpec(prepared["w1"].shape, const),          # w1
            pl.BlockSpec(prepared["b1"].shape, const),          # b1
            pl.BlockSpec(prepared["w2"].shape, const),          # w2
            pl.BlockSpec(prepared["b2"].shape, const),          # b2
            pl.BlockSpec(prepared["wh"].shape, const),          # fused head W
            pl.BlockSpec(prepared["bh"].shape, const),          # fused head b
        ],
        out_specs=pl.BlockSpec((tb, two_out), lambda i: (i, 0)),  # [mean | std]
        compiler_params=pltpu.CompilerParams(dimension_semantics=dim_sem),
        cost_estimate=cost,
    )(x, prepared["w1"], prepared["b1"], prepared["w2"], prepared["b2"],
      prepared["wh"], prepared["bh"])

    mean = fused[:, :output_size]
    std = fused[:, output_size:]
    return mean, std


def init_policy_params(key, input_size, output_size):
    """Deterministic init mimicking PyTorch nn.Linear default:
    U(-1/sqrt(fan_in), 1/sqrt(fan_in)) for weights and biases.
    Weights stored as [in, out]; biases as [1, out]."""
    def linear(key, fan_in, fan_out):
        kw, kb = jax.random.split(key)
        bound = 1.0 / math.sqrt(fan_in)
        w = jax.random.uniform(kw, (fan_in, fan_out), jnp.float32, -bound, bound)
        b = jax.random.uniform(kb, (1, fan_out), jnp.float32, -bound, bound)
        return w, b

    k1, k2, k3, k4 = jax.random.split(key, 4)
    w1, b1 = linear(k1, input_size, 128)
    w2, b2 = linear(k2, 128, 64)
    wm, bm = linear(k3, 64, output_size)
    ws, bs = linear(k4, 64, output_size)
    return dict(w1=w1, b1=b1, w2=w2, b2=b2, wm=wm, bm=bm, ws=ws, bs=bs)


def _reference_forward(x, p, epsilon=0.0001, compute_dtype=jnp.float32):
    """Pure-JAX reference with the same matmul-input casting as the kernel."""
    def mm(a, w):
        return jnp.dot(a.astype(compute_dtype), w.astype(compute_dtype),
                       preferred_element_type=jnp.float32)
    h1 = jnp.maximum(mm(x, p["w1"]) + p["b1"], 0.0)
    h2 = jnp.maximum(mm(h1, p["w2"]) + p["b2"], 0.0)
    mean = mm(h2, p["wm"]) + p["bm"]
    z = mm(h2, p["ws"]) + p["bs"]
    std = jnp.maximum(z, 0.0) + jnp.log1p(jnp.exp(-jnp.abs(z))) + epsilon
    return mean, std


def _check(x, params, prepared, tile_batch):
    mean, std = policy_forward(x, prepared, tile_batch=tile_batch)
    jax.block_until_ready((mean, std))
    batch = x.shape[0]
    output_size = prepared["wh"].shape[1] // 2
    assert mean.shape == (batch, output_size)
    assert std.shape == (batch, output_size)

    # exact-path check: reference with identical bf16 matmul-input casting
    ref_mean, ref_std = _reference_forward(x, params, compute_dtype=jnp.bfloat16)
    assert jnp.allclose(mean, ref_mean, atol=1e-3, rtol=1e-3)
    assert jnp.allclose(std, ref_std, atol=1e-3, rtol=1e-3)

    # loose check against the literal f32 PyTorch-style formula
    f_mean, f_std = _reference_forward(x, params, compute_dtype=jnp.float32)
    assert jnp.allclose(mean, f_mean, atol=5e-2, rtol=5e-2)
    assert jnp.allclose(std, f_std, atol=5e-2, rtol=5e-2)

    assert bool(jnp.all(std > 0.0))


if __name__ == "__main__":
    input_size = 32
    output_size = 8

    key = jax.random.PRNGKey(0)
    k_params, k_x1, k_x2 = jax.random.split(key, 3)
    params = init_policy_params(k_params, input_size, output_size)
    prepared = prepare_policy_params(params, compute_dtype=jnp.bfloat16)

    # Case 1: tiny batch -> single block equal to the full batch (no padding).
    x_small = jax.random.normal(k_x1, (2, input_size), jnp.float32)
    _check(x_small, params, prepared, tile_batch=2048)

    # Case 2: multi-step grid with a ragged edge block (300 rows, tb=128 -> 3
    # steps, last block only partially valid); validates edge masking and the
    # multi-TensorCore (CORE_PARALLEL) path where available.
    x_ragged = jax.random.normal(k_x2, (300, input_size), jnp.float32)
    _check(x_ragged, params, prepared, tile_batch=128)

    print("KERNEL_OK")
</pallas_src>

<mosaic_0001>
module attributes {stable_mosaic.version = 11 : i64} {
  func.func @_policy_kernel(%arg0: i32, %arg1: memref<2x32xf32, #tpu.memory_space<vmem>>, %arg2: memref<32x128xbf16, #tpu.memory_space<vmem>>, %arg3: memref<1x128xf32, #tpu.memory_space<vmem>>, %arg4: memref<128x64xbf16, #tpu.memory_space<vmem>>, %arg5: memref<1x64xf32, #tpu.memory_space<vmem>>, %arg6: memref<64x16xbf16, #tpu.memory_space<vmem>>, %arg7: memref<1x16xf32, #tpu.memory_space<vmem>>, %arg8: memref<2x16xf32, #tpu.memory_space<vmem>>) attributes {dimension_semantics = [#tpu.dimension_semantics<parallel>], iteration_bounds = array<i64: 1>, scalar_prefetch = 0 : i64, scratch_operands = 0 : i64, tpu.core_type = #tpu.core_type<tc>, window_params = [{transform_indices = @transform_0, window_bounds = array<i64: 2, 32>}, {pipeline_mode = #tpu.pipeline_mode<synchronous>, transform_indices = @transform_1, window_bounds = array<i64: 32, 128>}, {pipeline_mode = #tpu.pipeline_mode<synchronous>, transform_indices = @transform_2, window_bounds = array<i64: 1, 128>}, {pipeline_mode = #tpu.pipeline_mode<synchronous>, transform_indices = @transform_3, window_bounds = array<i64: 128, 64>}, {pipeline_mode = #tpu.pipeline_mode<synchronous>, transform_indices = @transform_4, window_bounds = array<i64: 1, 64>}, {pipeline_mode = #tpu.pipeline_mode<synchronous>, transform_indices = @transform_5, window_bounds = array<i64: 64, 16>}, {pipeline_mode = #tpu.pipeline_mode<synchronous>, transform_indices = @transform_6, window_bounds = array<i64: 1, 16>}, {transform_indices = @transform_7, window_bounds = array<i64: 2, 16>}]} {
    %c0 = arith.constant 0 : index
    %c0_0 = arith.constant 0 : index
    %0 = vector.load %arg1[%c0, %c0_0] : memref<2x32xf32, #tpu.memory_space<vmem>>, vector<2x32xf32>
    %1 = arith.truncf %0 : vector<2x32xf32> to vector<2x32xbf16>
    %c0_1 = arith.constant 0 : index
    %c0_2 = arith.constant 0 : index
    %2 = vector.load %arg2[%c0_1, %c0_2] : memref<32x128xbf16, #tpu.memory_space<vmem>>, vector<32x128xbf16>
    %cst = arith.constant dense<0.000000e+00> : vector<2x128xf32>
    %3 = tpu.matmul %1, %2, %cst {dimension_numbers = #tpu.dot_dimension_numbers<[1], [0], [0], [1], [0, 0, 1, 1], [], []>} : vector<2x32xbf16>, vector<32x128xbf16>, vector<2x128xf32> -> vector<2x128xf32>
    %c0_3 = arith.constant 0 : index
    %c0_4 = arith.constant 0 : index
    %4 = vector.load %arg3[%c0_3, %c0_4] : memref<1x128xf32, #tpu.memory_space<vmem>>, vector<1x128xf32>
    %5 = vector.broadcast %4 : vector<1x128xf32> to vector<2x128xf32>
    %6 = arith.addf %3, %5 : vector<2x128xf32>
    %cst_5 = arith.constant 0.000000e+00 : f32
    %7 = vector.broadcast %cst_5 : f32 to vector<2x128xf32>
    %8 = arith.maximumf %6, %7 : vector<2x128xf32>
    %9 = arith.truncf %8 : vector<2x128xf32> to vector<2x128xbf16>
    %c0_6 = arith.constant 0 : index
    %c0_7 = arith.constant 0 : index
    %10 = vector.load %arg4[%c0_6, %c0_7] : memref<128x64xbf16, #tpu.memory_space<vmem>>, vector<128x64xbf16>
    %cst_8 = arith.constant dense<0.000000e+00> : vector<2x64xf32>
    %11 = tpu.matmul %9, %10, %cst_8 {dimension_numbers = #tpu.dot_dimension_numbers<[1], [0], [0], [1], [0, 0, 1, 1], [], []>} : vector<2x128xbf16>, vector<128x64xbf16>, vector<2x64xf32> -> vector<2x64xf32>
    %c0_9 = arith.constant 0 : index
    %c0_10 = arith.constant 0 : index
    %12 = vector.load %arg5[%c0_9, %c0_10] : memref<1x64xf32, #tpu.memory_space<vmem>>, vector<1x64xf32>
    %13 = vector.broadcast %12 : vector<1x64xf32> to vector<2x64xf32>
    %14 = arith.addf %11, %13 : vector<2x64xf32>
    %cst_11 = arith.constant 0.000000e+00 : f32
    %15 = vector.broadcast %cst_11 : f32 to vector<2x64xf32>
    %16 = arith.maximumf %14, %15 : vector<2x64xf32>
    %17 = arith.truncf %16 : vector<2x64xf32> to vector<2x64xbf16>
    %c0_12 = arith.constant 0 : index
    %c0_13 = arith.constant 0 : index
    %18 = vector.load %arg6[%c0_12, %c0_13] : memref<64x16xbf16, #tpu.memory_space<vmem>>, vector<64x16xbf16>
    %cst_14 = arith.constant dense<0.000000e+00> : vector<2x16xf32>
    %19 = tpu.matmul %17, %18, %cst_14 {dimension_numbers = #tpu.dot_dimension_numbers<[1], [0], [0], [1], [0, 0, 1, 1], [], []>} : vector<2x64xbf16>, vector<64x16xbf16>, vector<2x16xf32> -> vector<2x16xf32>
    %c0_15 = arith.constant 0 : index
    %c0_16 = arith.constant 0 : index
    %20 = vector.load %arg7[%c0_15, %c0_16] : memref<1x16xf32, #tpu.memory_space<vmem>>, vector<1x16xf32>
    %21 = vector.broadcast %20 : vector<1x16xf32> to vector<2x16xf32>
    %22 = arith.addf %19, %21 : vector<2x16xf32>
    %cst_17 = arith.constant 0.000000e+00 : f32
    %23 = vector.broadcast %cst_17 : f32 to vector<2x16xf32>
    %24 = arith.maximumf %22, %23 : vector<2x16xf32>
    %25 = math.absf %22 : vector<2x16xf32>
    %cst_18 = arith.constant 0.000000e+00 : f32
    %26 = vector.broadcast %cst_18 : f32 to vector<2x16xf32>
    %27 = arith.subf %26, %25 : vector<2x16xf32>
    %28 = math.exp %27 : vector<2x16xf32>
    %29 = math.log1p %28 : vector<2x16xf32>
    %30 = arith.addf %24, %29 : vector<2x16xf32>
    %cst_19 = arith.constant 9.99999974E-5 : f32
    %31 = vector.broadcast %cst_19 : f32 to vector<2x16xf32>
    %32 = arith.addf %30, %31 : vector<2x16xf32>
    %33 = tpu.iota {dimensions = array<i32: 1>} : vector<2x16xi32>
    %c8_i32 = arith.constant 8 : i32
    %34 = vector.broadcast %c8_i32 : i32 to vector<2x16xi32>
    %35 = arith.cmpi sge, %33, %34 : vector<2x16xi32>
    %36 = arith.select %35, %32, %22 : vector<2x16xi1>, vector<2x16xf32>
    %c0_20 = arith.constant 0 : index
    %c0_21 = arith.constant 0 : index
    %37 = vector.load %arg8[%c0_20, %c0_21] : memref<2x16xf32, #tpu.memory_space<vmem>>, vector<2x16xf32>
    tpu.vector_store %arg8[%c0_20, %c0_21], %36 {strides = array<i32>} : memref<2x16xf32, #tpu.memory_space<vmem>>, vector<2x16xf32>,
    return
  }
  func.func @transform_0(%arg0: i32) -> (i32, i32) {
    %c0_i32 = arith.constant 0 : i32
    %c0_i32_0 = arith.constant 0 : i32
    return %arg0, %c0_i32 : i32, i32
  }
  func.func @transform_1(%arg0: i32) -> (i32, i32) {
    %c0_i32 = arith.constant 0 : i32
    %c0_i32_0 = arith.constant 0 : i32
    %c0_i32_1 = arith.constant 0 : i32
    return %c0_i32, %c0_i32_0 : i32, i32
  }
  func.func @transform_2(%arg0: i32) -> (i32, i32) {
    %c0_i32 = arith.constant 0 : i32
    %c0_i32_0 = arith.constant 0 : i32
    %c0_i32_1 = arith.constant 0 : i32
    return %c0_i32, %c0_i32_0 : i32, i32
  }
  func.func @transform_3(%arg0: i32) -> (i32, i32) {
    %c0_i32 = arith.constant 0 : i32
    %c0_i32_0 = arith.constant 0 : i32
    %c0_i32_1 = arith.constant 0 : i32
    return %c0_i32, %c0_i32_0 : i32, i32
  }
  func.func @transform_4(%arg0: i32) -> (i32, i32) {
    %c0_i32 = arith.constant 0 : i32
    %c0_i32_0 = arith.constant 0 : i32
    %c0_i32_1 = arith.constant 0 : i32
    return %c0_i32, %c0_i32_0 : i32, i32
  }
  func.func @transform_5(%arg0: i32) -> (i32, i32) {
    %c0_i32 = arith.constant 0 : i32
    %c0_i32_0 = arith.constant 0 : i32
    %c0_i32_1 = arith.constant 0 : i32
    return %c0_i32, %c0_i32_0 : i32, i32
  }
  func.func @transform_6(%arg0: i32) -> (i32, i32) {
    %c0_i32 = arith.constant 0 : i32
    %c0_i32_0 = arith.constant 0 : i32
    %c0_i32_1 = arith.constant 0 : i32
    return %c0_i32, %c0_i32_0 : i32, i32
  }
  func.func @transform_7(%arg0: i32) -> (i32, i32) {
    %c0_i32 = arith.constant 0 : i32
    %c0_i32_0 = arith.constant 0 : i32
    return %arg0, %c0_i32 : i32, i32
  }
}

</mosaic_0001>

<bundles_post_ra>
// kernel: tpu_custom_call.1
= control target key start
LH: loop header
LB: loop body
LE: loop exit
PB: predicated region body
PF: predicated region fallthrough
CT: control target
= control target key end

     0   :  { %s447_s0 = inlined_call_operand.vmem [shape: f32[2,32], index: 0, kind: input, shape index: {}]   ;;  %s448_s1 = inlined_call_operand.vmem [shape: bf16[32,128], index: 1, kind: input, shape index: {}]   ;;  %s449_s2 = inlined_call_operand.vmem [shape: f32[1,128], index: 2, kind: input, shape index: {}]   ;;  %s450_s3 = inlined_call_operand.vmem [shape: bf16[128,64], index: 3, kind: input, shape index: {}]   ;;  %s451_s4 = inlined_call_operand.vmem [shape: f32[1,64], index: 4, kind: input, shape index: {}]   ;;  %s452_s5 = inlined_call_operand.vmem [shape: bf16[64,16], index: 5, kind: input, shape index: {}]   ;;  %s453_s6 = inlined_call_operand.vmem [shape: f32[1,16], index: 6, kind: input, shape index: {}]   ;;  %s454_s7 = inlined_call_operand.hbm [shape: f32[2,16], index: 7, kind: output, shape index: {}]  }
   0x1   :  { %v302_v0 = vld [vmem:[%s448_s1 + $0x8] sm:$0xff]  ;;  %v310_v1 = vld [vmem:[%s450_s3 + $0x38] sm:$0xff]  ;;  %v301_v2 = vld [vmem:[%s448_s1] sm:$0xff] }
   0x2   :  { %60 = vmatpush.bf16.msra.mxu0 %v302_v0  ;;  %v28_v3 = vld [vmem:[%s447_s0] sm:$0x3]  ;;  %137 = vmatpush.bf16.msra.mxu1 %v310_v1  ;;  %v309_v4 = vld [vmem:[%s450_s3 + $0x30] sm:$0xff] }
   0x3   :  { %12 = vsyncpa [#allocation3], 0  ;;  %v29_v5 = vpack.c.bf16 %v28_v3, %v28_v3  ;;  %vm50_vm0 = vcmask 261120   ;;  %v308_v6 = vld [vmem:[%s450_s3 + $0x28] sm:$0xff]  ;;  %v307_v7 = vld [vmem:[%s450_s3 + $0x20] sm:$0xff]  ;;  %vm188_vm1 = vcmask 523264   ;;  %v221_v39 = vlaneseq }
   0x4   :  { %v306_v8 = vld [vmem:[%s450_s3 + $0x18] sm:$0xff]  ;;  %v305_v9 = vld [vmem:[%s450_s3 + $0x10] sm:$0xff]  ;;  %v304_v10 = vld [vmem:[%s450_s3 + $0x8] sm:$0xff]  ;;  %s234_s11 = sshll.u32 %s454_s7, 4  ;;  %vm225_vm4 = vcmask 123904   ;;  %s235_s11 = int_to_ptr.hbm [resolvable:$true] %s234_s11 }
   0x5   :  { %v303_v11 = vld [vmem:[%s450_s3] sm:$0xff]  ;;  %v314_v12 = vld [vmem:[%s452_s5 + $0x18] sm:$0xff]  ;;  %v313_v13 = vld [vmem:[%s452_s5 + $0x10] sm:$0xff]  ;;  %v222_v44 = vand.u32 127, %v221_v39 }
   0x6   :  { %61 = vmatpush.bf16.msra.mxu0 %v301_v2  ;;  %138 = vmatpush.bf16.msra.mxu1 %v309_v4  ;;  %v316_v14 = vld [vmem:[%s449_s2] ss:$0 sm:$0xff]  ;;  %v312_v20 = vld [vmem:[%s452_s5 + $0x8] sm:$0xff] }
   0x7   :  { %196 = vmatpush.bf16.msra.mxu2 %v314_v12  ;;  %v311_v21 = vld [vmem:[%s452_s5] sm:$0xff]  ;;  %vm223_vm3 = vcmp.ge.s32.totalorder %v222_v44, 8 }
   0x8   :  { %v317_v22 = vld [vmem:[%s451_s4] ss:$0 sm:$0xff]  ;;  %s349_s4 = smov [#allocation2]  }
   0x9   :  { %251 = vmatmul.msk.bf16.vlgmr.msra.gmra.mxu0 %vm50_vm0, %v29_v5  ;;  %v318_v28 = vld [vmem:[%s453_s6] ss:$0 sm:$0xff]  ;;  %s232_s5 = sshll.u32 %s349_s4, 4  ;;  %s233_s5 = int_to_ptr.vmem [resolvable:$true] %s232_s5 }
   0xa   :  { %139 = vmatpush.bf16.msra.mxu1 %v308_v6 }
   0xb   :  { %197 = vmatpush.bf16.msra.mxu2 %v313_v13 }
   0xe   :  { %140 = vmatpush.bf16.msra.mxu1 %v307_v7 }
   0xf   :  { %198 = vmatpush.bf16.msra.mxu2 %v312_v20 }
  0x12   :  { %141 = vmatpush.bf16.msra.mxu1 %v306_v8 }
  0x13   :  { %199 = vmatpush.bf16.msra.mxu2 %v311_v21 }
  0x16   :  { %142 = vmatpush.bf16.msra.mxu1 %v305_v9 }
  0x1a   :  { %143 = vmatpush.bf16.msra.mxu1 %v304_v10 }
  0x1e   :  { %144 = vmatpush.bf16.msra.mxu1 %v303_v11 }
  0x86   :  { %v63_v15 = vpop.f32.mrf.mxu0 }
  0x87   :  { %v64_v16 = vadd.f32 %v316_v14, %v63_v15 }
  0x89   :  { %v67_v17 = vmax.f32 %v64_v16, 0.0 }
  0x8b   :  { %v68_v18 = vpack.c.bf16 %v67_v17, %v67_v17 }
  0x8d   :  { %145 = vmatmul.bf16.vlgmr.msra.gmra.mxu1 %v68_v18 }
  0x8e   :  { %v65_v19 = vpop.f32.mrf.mxu0 }
 0x10a   :  { %v146_v23 = vpop.f32.mrf.mxu1 }
 0x10b   :  { %v147_v24 = vadd.f32 %v317_v22, %v146_v23 }
 0x10d   :  { %v150_v25 = vmax.f32 %v147_v24, 0.0 }
 0x10f   :  { %v151_v26 = vpack.c.bf16 %v150_v25, %v150_v25 }
 0x111   :  { %300 = vmatmul.msk.bf16.vlgmr.msra.gmra.mxu2 %vm188_vm1, %v151_v26 }
 0x112   :  { %v148_v27 = vpop.f32.mrf.mxu1 }
 0x194   :  { %v201_v29 = vpop.f32.mrf.mxu2 }
 0x195   :  { %v202_v30 = vadd.f32 %v318_v28, %v201_v29 }
 0x197   :  { %v206_v31 = vand.u32 2147483647, %v202_v30  ;;  %v205_v45 = vmax.f32 %v202_v30, 0.0 }
 0x199   :  { %v207_v32 = vsub.f32 0.0, %v206_v31 }
 0x19b   :  { %v208_v33 = vmul.f32 1.442695, %v207_v32 }
 0x19c   :  { %v203_v34 = vpop.f32.mrf.mxu2 }
 0x19d   :  { %319 = vpow2.f32 %v208_v33 }
 0x1a3   :  { %v320_v35 = vpop.eup %319 }
 0x1a4   :  { %v210_v36 = vadd.f32 1.0, %v320_v35  ;;  %v213_v37 = vmul.f32 -0.5, %v320_v35  ;;  %v216_v40 = vand.u32 2147483647, %v320_v35 }
 0x1a6   :  { %321 = vlog2.f32 %v210_v36  ;;  %v214_v38 = vadd.f32 1.0, %v213_v37  ;;  %vm217_vm2 = vcmp.lt.f32.partialorder %v216_v40, 0.0004427343 }
 0x1a8   :  { %v215_v43 = vmul.f32 %v320_v35, %v214_v38 }
 0x1ac   :  { %v322_v41 = vpop.eup %321 }
 0x1ad   :  { %v212_v42 = vmul.f32 0.6931472, %v322_v41 }
 0x1af   :  { %v218_v46 = vsel %vm217_vm2, %v215_v43, %v212_v42 }
 0x1b0   :  { %v219_v47 = vadd.f32 %v218_v46, %v205_v45 }
 0x1b2   :  { %v220_v48 = vadd.f32 0.0001, %v219_v47 }
 0x1b4   :  { %v224_v49 = vsel %vm223_vm3, %v220_v48, %v202_v30 }
 0x1b5   :  { %226 = vst.msk [vmem:[#allocation2] sm:$0x3] %vm225_vm4, %v224_v49 }
 0x1b6   :  { %237 = dma.vmem_to_hbm [thread:$0]  %s233_s5, 32, %s235_s11, [#allocation3]  }
 0x1b7   :  { %347 = dma.done.wait [#allocation3], 32  }
 0x1b8   :  { %348 = vsyncadd [#allocation3], 4294967264 }
 0x1b9   :  { %242 = vsyncpa [#allocation3], 1 }

</bundles_post_ra>
